<compile_context>
chip_gen: v5e
topology: v5e:2x2
jax: 0.10.0
libtpu: 0.0.40
codegen_flags: <defaults>
</compile_context>

<pallas_src>
import functools

import jax
import jax.numpy as jnp
from jax.experimental import pallas as pl
from jax.experimental.pallas import tpu as pltpu

EPSILON = 0.1


def _ce_label_smooth_kernel(logits_ref, targets_ref, partial_ref, *,
                            n_total, tile_n, epsilon):
    # logits_ref:  (TILE_N, C) in VMEM, native dtype (f32 / bf16 / ...)
    # targets_ref: (TILE_N, 1) int32 in VMEM
    # partial_ref: (1, 1) float32 block in SMEM (per-tile partial sum)
    x = logits_ref[...].astype(jnp.float32)                     # (TILE_N, C)
    t = targets_ref[...]                                        # (TILE_N, 1)
    tn, c = x.shape

    # Numerically stable log-sum-exp along classes (dim=1).
    m = jnp.max(x, axis=1, keepdims=True)                       # (TILE_N, 1)
    z = x - m                                                   # (TILE_N, C)
    lse = jnp.log(jnp.sum(jnp.exp(z), axis=1, keepdims=True))   # (TILE_N, 1)

    # z[target] via one iota-compare + select + row-reduce (no onehot tensor).
    class_ids = jax.lax.broadcasted_iota(jnp.int32, (tn, c), 1)
    tgt_z = jnp.sum(jnp.where(class_ids == t, z, 0.0),
                    axis=1, keepdims=True)                      # (TILE_N, 1)
    sum_z = jnp.sum(z, axis=1, keepdims=True)                   # (TILE_N, 1)

    # sum_c -smooth_c * log_probs_c == lse - (1-eps)*z[t] - (eps/C)*sum_c z_c
    # (eps/C uses the true full class count c, class axis is not tiled.)
    row_loss = lse - (1.0 - epsilon) * tgt_z - (epsilon / c) * sum_z

    # Mask padded tail rows (N % TILE_N != 0) out of the partial sum.
    row_ids = (pl.program_id(0) * tile_n
               + jax.lax.broadcasted_iota(jnp.int32, (tn, 1), 0))
    row_loss = jnp.where(row_ids < n_total, row_loss, 0.0)

    partial_ref[0, 0] = jnp.sum(row_loss)


def _pick_tile_n(n, c, itemsize, vmem_budget_bytes=48 * 1024 * 1024):
    # Per batch row live in VMEM: double-buffered input tile (native dtype)
    # plus ~2 f32 (TILE_N, C) temporaries, plus small per-row vectors.
    bytes_per_row = c * (2 * itemsize + 2 * 4) + 128 * 4
    tile = vmem_budget_bytes // max(bytes_per_row, 1)
    tile = max(8, min(int(tile), 1024))
    tile = (tile // 8) * 8                       # sublane-aligned
    n_rounded = ((n + 7) // 8) * 8
    return min(tile, n_rounded)


def cross_entropy_label_smooth(logits, targets, epsilon=EPSILON):
    """logits: (N, C) float (any dtype), targets: (N,) int -> scalar f32 loss."""
    n, c = logits.shape
    # Do NOT upcast logits here: stream the native dtype, upcast inside VMEM.
    targets2d = targets.astype(jnp.int32).reshape(n, 1)

    tile_n = _pick_tile_n(n, c, jnp.dtype(logits.dtype).itemsize)
    num_tiles = pl.cdiv(n, tile_n)

    kernel = functools.partial(
        _ce_label_smooth_kernel, n_total=n, tile_n=tile_n, epsilon=epsilon)

    partials = pl.pallas_call(
        kernel,
        out_shape=jax.ShapeDtypeStruct((num_tiles, 1), jnp.float32),
        grid=(num_tiles,),
        in_specs=[
            pl.BlockSpec((tile_n, c), lambda i: (i, 0)),   # logits tile (VMEM)
            pl.BlockSpec((tile_n, 1), lambda i: (i, 0)),   # targets tile (VMEM)
        ],
        out_specs=pl.BlockSpec((1, 1), lambda i: (i, 0),
                               memory_space=pltpu.SMEM),   # per-tile partial
        compiler_params=pltpu.CompilerParams(
            dimension_semantics=("parallel",),
            vmem_limit_bytes=64 * 1024 * 1024,
        ),
    )(logits, targets2d)

    # Final reduction: sum of per-tile partials / true N  (== mean(0).sum()).
    return jnp.sum(partials) / n


def _reference(logits, targets, epsilon=EPSILON):
    # Pure-JAX reference mirroring the PyTorch forward.
    log_probs = jax.nn.log_softmax(logits.astype(jnp.float32), axis=1)
    n, c = logits.shape
    onehot = jax.nn.one_hot(targets, c, dtype=jnp.float32)
    smooth = (1.0 - epsilon) * onehot + epsilon / c
    return jnp.sum(jnp.mean(-smooth * log_probs, axis=0))


if __name__ == "__main__":
    key = jax.random.PRNGKey(0)
    k1, k2 = jax.random.split(key)
    N, C = 8, 32  # batch=8, num_classes=32
    logits = jax.random.normal(k1, (N, C), dtype=jnp.float32)
    targets = jax.random.randint(k2, (N,), 0, C, dtype=jnp.int32)

    loss = cross_entropy_label_smooth(logits, targets)
    loss = jax.block_until_ready(loss)

    ref = _reference(logits, targets)
    assert jnp.allclose(loss, ref, atol=1e-5, rtol=1e-5), (loss, ref)
    print("KERNEL_OK")
</pallas_src>

<mosaic_0001>
module attributes {stable_mosaic.version = 11 : i64} {
  func.func @_ce_label_smooth_kernel(%arg0: i32, %arg1: memref<8x32xf32, #tpu.memory_space<vmem>>, %arg2: memref<8x1xi32, #tpu.memory_space<vmem>>, %arg3: memref<1x1xf32, #tpu.memory_space<smem>>) attributes {dimension_semantics = [#tpu.dimension_semantics<parallel>], iteration_bounds = array<i64: 1>, scalar_prefetch = 0 : i64, scratch_operands = 0 : i64, tpu.core_type = #tpu.core_type<tc>, window_params = [{transform_indices = @transform_0, window_bounds = array<i64: 8, 32>}, {transform_indices = @transform_1, window_bounds = array<i64: 8, 1>}, {transform_indices = @transform_2, window_bounds = array<i64: 1, 1>}]} {
    %c0 = arith.constant 0 : index
    %c0_0 = arith.constant 0 : index
    %0 = vector.load %arg1[%c0, %c0_0] : memref<8x32xf32, #tpu.memory_space<vmem>>, vector<8x32xf32>
    %c0_1 = arith.constant 0 : index
    %c0_2 = arith.constant 0 : index
    %1 = vector.load %arg2[%c0_1, %c0_2] : memref<8x1xi32, #tpu.memory_space<vmem>>, vector<8x1xi32>
    %cst = arith.constant dense<0xFF800000> : vector<8xf32>
    %2 = vector.multi_reduction <maximumf>, %0, %cst [1] : vector<8x32xf32> to vector<8xf32>
    %3 = vector.shape_cast %2 : vector<8xf32> to vector<8x1xf32>
    %4 = vector.broadcast %3 : vector<8x1xf32> to vector<8x32xf32>
    %5 = arith.subf %0, %4 : vector<8x32xf32>
    %6 = math.exp %5 : vector<8x32xf32>
    %cst_3 = arith.constant dense<0.000000e+00> : vector<8xf32>
    %7 = vector.multi_reduction <add>, %6, %cst_3 [1] : vector<8x32xf32> to vector<8xf32>
    %8 = vector.shape_cast %7 : vector<8xf32> to vector<8x1xf32>
    %9 = math.log %8 : vector<8x1xf32>
    %10 = tpu.iota {dimensions = array<i32: 1>} : vector<8x32xi32>
    %11 = vector.broadcast %1 : vector<8x1xi32> to vector<8x32xi32>
    %12 = arith.cmpi eq, %10, %11 : vector<8x32xi32>
    %cst_4 = arith.constant 0.000000e+00 : f32
    %13 = vector.broadcast %cst_4 : f32 to vector<8x32xf32>
    %14 = arith.select %12, %5, %13 : vector<8x32xi1>, vector<8x32xf32>
    %cst_5 = arith.constant dense<0.000000e+00> : vector<8xf32>
    %15 = vector.multi_reduction <add>, %14, %cst_5 [1] : vector<8x32xf32> to vector<8xf32>
    %16 = vector.shape_cast %15 : vector<8xf32> to vector<8x1xf32>
    %cst_6 = arith.constant dense<0.000000e+00> : vector<8xf32>
    %17 = vector.multi_reduction <add>, %5, %cst_6 [1] : vector<8x32xf32> to vector<8xf32>
    %18 = vector.shape_cast %17 : vector<8xf32> to vector<8x1xf32>
    %cst_7 = arith.constant 0.899999976 : f32
    %19 = vector.broadcast %cst_7 : f32 to vector<8x1xf32>
    %20 = arith.mulf %19, %16 : vector<8x1xf32>
    %21 = arith.subf %9, %20 : vector<8x1xf32>
    %cst_8 = arith.constant 3.125000e-03 : f32
    %22 = vector.broadcast %cst_8 : f32 to vector<8x1xf32>
    %23 = arith.mulf %22, %18 : vector<8x1xf32>
    %24 = arith.subf %21, %23 : vector<8x1xf32>
    %c8_i32 = arith.constant 8 : i32
    %25 = arith.muli %arg0, %c8_i32 : i32
    %26 = tpu.iota {dimensions = array<i32: 0>} : vector<8x1xi32>
    %27 = vector.broadcast %25 : i32 to vector<8x1xi32>
    %28 = arith.addi %27, %26 : vector<8x1xi32>
    %c8_i32_9 = arith.constant 8 : i32
    %29 = vector.broadcast %c8_i32_9 : i32 to vector<8x1xi32>
    %30 = arith.cmpi slt, %28, %29 : vector<8x1xi32>
    %cst_10 = arith.constant 0.000000e+00 : f32
    %31 = vector.broadcast %cst_10 : f32 to vector<8x1xf32>
    %32 = arith.select %30, %24, %31 : vector<8x1xi1>, vector<8x1xf32>
    %33 = vector.shape_cast %32 : vector<8x1xf32> to vector<1x8x1xf32>
    %cst_11 = arith.constant dense<0.000000e+00> : vector<1xf32>
    %34 = vector.multi_reduction <add>, %33, %cst_11 [1, 2] : vector<1x8x1xf32> to vector<1xf32>
    %35 = vector.shape_cast %34 : vector<1xf32> to vector<1x1x1xf32>
    %36 = vector.extract %35[0, 0, 0] : f32 from vector<1x1x1xf32>
    %c0_12 = arith.constant 0 : index
    %c0_13 = arith.constant 0 : index
    %37 = memref.load %arg3[%c0_12, %c0_13] : memref<1x1xf32, #tpu.memory_space<smem>>
    memref.store %36, %arg3[%c0_12, %c0_13] : memref<1x1xf32, #tpu.memory_space<smem>>
    return
  }
  func.func @transform_0(%arg0: i32) -> (i32, i32) {
    %c0_i32 = arith.constant 0 : i32
    %c0_i32_0 = arith.constant 0 : i32
    return %arg0, %c0_i32 : i32, i32
  }
  func.func @transform_1(%arg0: i32) -> (i32, i32) {
    %c0_i32 = arith.constant 0 : i32
    %c0_i32_0 = arith.constant 0 : i32
    return %arg0, %c0_i32 : i32, i32
  }
  func.func @transform_2(%arg0: i32) -> (i32, i32) {
    %c0_i32 = arith.constant 0 : i32
    %c0_i32_0 = arith.constant 0 : i32
    return %arg0, %c0_i32 : i32, i32
  }
}

</mosaic_0001>

<bundles_post_ra>
// kernel: tpu_custom_call.1
= control target key start
LH: loop header
LB: loop body
LE: loop exit
PB: predicated region body
PF: predicated region fallthrough
CT: control target
= control target key end

     0   :  { %vm14_vm0 = vcmask 261120   ;;  %s131_s0 = inlined_call_operand.vmem [shape: f32[8,32], index: 0, kind: input, shape index: {}]   ;;  %s132_s1 = inlined_call_operand.vmem [shape: s32[8,1], index: 1, kind: input, shape index: {}]   ;;  %s133_s2 = inlined_call_operand.hbm [shape: f32[1,1], index: 2, kind: output, shape index: {}]  }
   0x1   :  { %v12_v0 = vld [vmem:[%s131_s0] sm:$0xff] }
   0x2   :  { %7 = vsyncpa [#allocation3], 0  ;;  %v15_v1 = vsel %vm14_vm0, %v12_v0, -inf  ;;  %v101_v2 = vmov 0   ;;  %v13_v3 = vld [vmem:[%s132_s1] sm:$0xff]  ;;  %v26_v10 = vlaneseq  ;;  %vm50_vm2 = vcmask 7168  }
   0x3   :  { %82 = vset.pattern.permute.xlu0 %v101_v2  ;;  %s68_s13 = sshll.u32 %s133_s2, 4  ;;  %s102_s15 = smov [#allocation2]   ;;  %s69_s13 = int_to_ptr.hbm [resolvable:$true] %s68_s13 }
   0x4   :  { %16 = vmax.xlane.f32.xlu0 %v15_v1  ;;  %v27_v11 = vand.u32 127, %v26_v10 }
  0x18   :  { %29 = vperm.xlu0 %82, %v13_v3  }
  0x77   :  { %v17_v4 = vpop.xlane.xlu0 %16 }
  0x78   :  { %v18_v5 = vsub.f32 %v12_v0, %v17_v4 }
  0x7a   :  { %v19_v6 = vmul.f32 1.442695, %v18_v5  ;;  %v36_v7 = vsel %vm14_vm0, %v18_v5, 0.0 }
  0x7b   :  { %37 = vadd.xlane.f32.xlu2 %v36_v7 }
  0x7c   :  { %83 = vpow2.f32 %v19_v6 }
  0x82   :  { %v84_v8 = vpop.eup %83 }
  0x83   :  { %v21_v9 = vsel %vm14_vm0, %v84_v8, 0.0 }
  0x84   :  { %22 = vadd.xlane.f32.xlu1 %v21_v9 }
  0x8a   :  { %v30_v12 = vpop.permute.xlu0 %29 }
  0x8b   :  { %vm31_vm1 = vcmp.eq.s32.totalorder %v27_v11, %v30_v12 }
  0x8c   :  { %v32_v13 = vsel %vm31_vm1, %v18_v5, 0.0 }
  0x8d   :  { %v33_v14 = vsel %vm14_vm0, %v32_v13, 0.0 }
  0x8e   :  { %34 = vadd.xlane.f32.xlu1 %v33_v14 }
  0xee   :  { %v38_v17 = vpop.xlane.xlu2 %37 }
  0xef   :  { %v41_v21 = vmul.f32 0.003125, %v38_v17 }
  0xf7   :  { %v23_v15 = vpop.xlane.xlu1 %22 }
  0xf8   :  { %85 = vlog2.f32 %v23_v15 }
  0xfe   :  { %v86_v16 = vpop.eup %85 }
  0xff   :  { %v25_v19 = vmul.f32 0.6931472, %v86_v16 }
 0x101   :  { %v35_v18 = vpop.xlane.xlu1 %34 }
 0x102   :  { %v39_v20 = vmul.f32 0.9, %v35_v18 }
 0x104   :  { %v40_v22 = vsub.f32 %v25_v19, %v39_v20 }
 0x106   :  { %v42_v23 = vsub.f32 %v40_v22, %v41_v21 }
 0x108   :  { %v51_v24 = vsel %vm50_vm2, %v42_v23, 0.0 }
 0x109   :  { %52 = vadd.xlane.f32.xlu2 %v51_v24 }
 0x17c   :  { %v53_v25 = vpop.xlane.xlu2 %52 }
 0x17d   :  { %v54_v26 = vrot.slane %v53_v25, 4 }
 0x17f   :  { %v55_v27 = vadd.f32 %v54_v26, %v53_v25 }
 0x181   :  { %v56_v28 = vrot.slane %v55_v27, 2 }
 0x183   :  { %v57_v29 = vadd.f32 %v56_v28, %v55_v27 }
 0x185   :  { %v58_v30 = vrot.slane %v57_v29, 1 }
 0x187   :  { %v59_v31 = vadd.f32 %v58_v30, %v57_v29 }
 0x189   :  { %78 = vpush %v59_v31 }
 0x1ba   :  { %s79_s14 = spop %78 }
 0x1bb   :  { %62 = sst [smem:[#allocation2]] %s79_s14 }
 0x1bc   :  { %71 = dma.smem_to_hbm %s102_s15, 16, %s69_s13, [#allocation3]  }
 0x1bd   :  { %99 = dma.done.wait [#allocation3], 16  }
 0x1be   :  { %100 = vsyncadd [#allocation3], 4294967280 }
 0x1bf   :  { %76 = sfence }
 0x1c0   :  { %77 = vsyncpa [#allocation3], 1 }

</bundles_post_ra>
